<compile_context>
chip_gen: v6e
topology: v6e:2x2x1
jax: 0.10.0
libtpu: 0.0.40
codegen_flags: <defaults>
</compile_context>

<pallas_src>
import numpy as np
import jax
import jax.numpy as jnp
from jax import lax
from jax.experimental import pallas as pl
from jax.experimental.pallas import tpu as pltpu

LANES = 128
SUBLANES = 8


def spatial_discounting_mask(mask_width, mask_height, discounting_gamma, discounting=1):
    """Exact replica of the reference numpy mask constructor (returns (1,1,H,W))."""
    gamma = discounting_gamma
    shape = [1, 1, mask_width, mask_height]
    if discounting:
        mask_values = np.ones((mask_width, mask_height), dtype='float32')
        for i in range(mask_width):
            for j in range(mask_height):
                mask_values[i, j] = max(gamma ** min(i, mask_width - i),
                                        gamma ** min(j, mask_height - j))
        mask_values = np.expand_dims(mask_values, 0)
        mask_values = np.expand_dims(mask_values, 1)
    else:
        mask_values = np.ones(shape, dtype='float32')
    return mask_values


def _fold_to_vreg(d):
    """Reduce a (rows, 128) f32 tile to one (8, 128) partial with VPU-only adds."""
    rows = d.shape[0]
    if rows % SUBLANES == 0:
        return d.reshape(-1, SUBLANES, LANES).sum(axis=0)
    # Odd-sized tiny tile: put the column sum in sublane 0, zeros elsewhere.
    s = d.sum(axis=0, keepdims=True)                                    # (1, 128)
    row = lax.broadcasted_iota(jnp.int32, (SUBLANES, LANES), 0)
    return jnp.where(row == 0, s, jnp.float32(0.0))


def _make_kernel(valid_rows, block_rows, chunk_rows, n_chunks, need_row_mask):
    def kernel(x_ref, y_ref, m_ref, out_ref):
        i = pl.program_id(0)
        m = m_ref[...]                                                  # (chunk_rows, 128) f32
        n_acc = 2 if n_chunks >= 2 else 1
        accs = [jnp.zeros((SUBLANES, LANES), jnp.float32) for _ in range(n_acc)]
        for c in range(n_chunks):                                       # short static loop, unrolled
            r0 = c * chunk_rows
            x = x_ref[pl.ds(r0, chunk_rows), :].astype(jnp.float32)     # upcast in-register
            y = y_ref[pl.ds(r0, chunk_rows), :].astype(jnp.float32)
            d = jnp.abs(x - y) * m            # mask >= 0  =>  |x*m - y*m| == |x - y| * m
            if need_row_mask:
                # Partial last block: exclude out-of-range rows with a SELECT
                # (never multiply-by-garbage -> NaN/Inf in padding is harmless).
                g = (i * block_rows + r0
                     + lax.broadcasted_iota(jnp.int32, (chunk_rows, LANES), 0))
                d = jnp.where(g < valid_rows, d, jnp.float32(0.0))
            accs[c % n_acc] = accs[c % n_acc] + _fold_to_vreg(d)
        out_ref[...] = accs[0] if n_acc == 1 else (accs[0] + accs[1])
    return kernel


def discounted_l1(inp, target, mask, *, max_block_rows=4096, target_chunk_rows=512):
    """inp/target: (N, C, H, W); mask: numpy array with H*W values (e.g. (1,1,H,W)).
    Returns scalar mean(|inp*mask - target*mask|).  max_block_rows=4096 is safe on
    v5e/v6e/v7x scoped-VMEM defaults; v6e can use 8192."""
    assert inp.shape == target.shape
    H, W = inp.shape[-2], inp.shape[-1]
    HW = H * W
    numel = int(np.prod(inp.shape))

    mask1d = np.asarray(mask, dtype=np.float32).reshape(-1)
    assert mask1d.size == HW, "mask spatial size must match input spatial size"
    # Factoring |x*m - y*m| == |x - y| * m requires a non-negative mask.
    assert np.all(mask1d >= 0.0), "discounting mask must be non-negative"

    # Mask repeats every HW flat elements -> lane-dense rows repeat with this period.
    L = int(np.lcm(HW, LANES))
    row_period = L // LANES
    pattern = np.tile(mask1d, L // HW).reshape(row_period, LANES)       # (row_period, 128)

    rows = numel // LANES          # full 128-lane rows handled by the kernel
    tail = numel % LANES           # leftover (< 128) handled in plain jnp

    x_flat = inp.reshape(-1)       # native dtype, no copies
    y_flat = target.reshape(-1)

    total = jnp.zeros((), jnp.float32)

    if rows > 0:
        base = int(np.lcm(SUBLANES, row_period))   # chunk granularity (sublane + mask period)
        # TODO(synk): for pathological mask sizes where base > max_block_rows, fall back
        # to streaming the broadcast mask; never hit for this module's square masks.
        assert base <= max_block_rows, "mask row period too large for constant-tile path"

        if rows >= base:
            chunk_rows = base * max(1, target_chunk_rows // base)
            half_rows = (max(rows // 2, base) // base) * base           # aim for grid >= 2
            chunk_rows = min(chunk_rows, half_rows)
            cpb = max(1, min(max_block_rows // chunk_rows, half_rows // chunk_rows))
            block_rows = chunk_rows * cpb
        else:
            # Tiny input: one full-extent block (block == array dims is allowed).
            chunk_rows = rows
            block_rows = rows

        n_chunks = block_rows // chunk_rows
        grid = -(-rows // block_rows)
        need_row_mask = (rows % block_rows) != 0

        x2 = x_flat[: rows * LANES].reshape(rows, LANES)
        y2 = y_flat[: rows * LANES].reshape(rows, LANES)

        reps = -(-chunk_rows // row_period)
        mask_tile = jnp.asarray(np.tile(pattern, (reps, 1))[:chunk_rows])   # (chunk_rows, 128)

        kernel = _make_kernel(rows, block_rows, chunk_rows, n_chunks, need_row_mask)
        partials = pl.pallas_call(
            kernel,
            out_shape=jax.ShapeDtypeStruct((grid * SUBLANES, LANES), jnp.float32),
            grid_spec=pltpu.PrefetchScalarGridSpec(
                num_scalar_prefetch=0,
                grid=(grid,),
                in_specs=[
                    pl.BlockSpec((block_rows, LANES), lambda i: (i, 0)),    # input stream
                    pl.BlockSpec((block_rows, LANES), lambda i: (i, 0)),    # target stream
                    pl.BlockSpec((chunk_rows, LANES), lambda i: (0, 0)),    # tiny mask tile (fetched once)
                ],
                out_specs=pl.BlockSpec((SUBLANES, LANES), lambda i: (i, 0)),  # lane-dense partial
            ),
            compiler_params=pltpu.CompilerParams(
                dimension_semantics=("parallel",),   # independent partials -> megacore on v7x
            ),
        )(x2, y2, mask_tile)
        total = total + jnp.sum(partials)

    if tail > 0:
        tail_mask = jnp.asarray(mask1d[np.arange(rows * LANES, numel) % HW])
        xt = x_flat[rows * LANES:].astype(jnp.float32)
        yt = y_flat[rows * LANES:].astype(jnp.float32)
        total = total + jnp.sum(jnp.abs(xt - yt) * tail_mask)

    # Scale the final scalar (numerically safer than folding 1/numel into the mask).
    return total / np.float32(numel)


def _ref_loss(inp, tgt, mask_vals):
    m = jnp.asarray(mask_vals)                    # (1,1,H,W) broadcast, as in the module
    return jnp.mean(jnp.abs(inp * m - tgt * m))


if __name__ == "__main__":
    # opt.fineSize = 32, opt.overlap = 4, opt.discounting = 1  ->  mask is 8x8
    fineSize, overlap, discounting, gamma = 32, 4, 1, 0.9
    msize = fineSize // 2 - overlap * 2           # 8
    mask_vals = spatial_discounting_mask(msize, msize, gamma, discounting)  # (1,1,8,8) numpy

    key = jax.random.PRNGKey(0)
    cases = [
        ((2, 16, msize, msize), {}),                          # main path: grid=2, full blocks
        ((2, 64, msize, msize), dict(target_chunk_rows=8)),   # multi-chunk accumulation path
        ((2, 20, msize, msize), {}),                          # partial last block (row masking)
        ((3, 5, msize, msize), {}),                           # tiny block + sub-128 tail path
    ]
    for shape, kw in cases:
        key, k1, k2 = jax.random.split(key, 3)
        inp = jax.random.normal(k1, shape, dtype=jnp.float32)
        tgt = jax.random.normal(k2, shape, dtype=jnp.float32)
        loss = jax.block_until_ready(discounted_l1(inp, tgt, mask_vals, **kw))
        ref = _ref_loss(inp, tgt, mask_vals)
        assert jnp.allclose(loss, ref, rtol=1e-5, atol=1e-6), (shape, float(loss), float(ref))

    print("KERNEL_OK")
</pallas_src>

<mosaic_0001>
module attributes {stable_mosaic.version = 11 : i64} {
  func.func @kernel(%arg0: i32, %arg1: memref<8x128xf32, #tpu.memory_space<vmem>>, %arg2: memref<8x128xf32, #tpu.memory_space<vmem>>, %arg3: memref<8x128xf32, #tpu.memory_space<vmem>>, %arg4: memref<8x128xf32, #tpu.memory_space<vmem>>) attributes {dimension_semantics = [#tpu.dimension_semantics<parallel>], iteration_bounds = array<i64: 2>, scalar_prefetch = 0 : i64, scratch_operands = 0 : i64, tpu.core_type = #tpu.core_type<tc>, window_params = [{transform_indices = @transform_0, window_bounds = array<i64: 8, 128>}, {transform_indices = @transform_1, window_bounds = array<i64: 8, 128>}, {pipeline_mode = #tpu.pipeline_mode<synchronous>, transform_indices = @transform_2, window_bounds = array<i64: 8, 128>}, {transform_indices = @transform_3, window_bounds = array<i64: 8, 128>}]} {
    %c0 = arith.constant 0 : index
    %c0_0 = arith.constant 0 : index
    %0 = vector.load %arg3[%c0, %c0_0] : memref<8x128xf32, #tpu.memory_space<vmem>>, vector<8x128xf32>
    %cst = arith.constant 0.000000e+00 : f32
    %1 = vector.broadcast %cst : f32 to vector<8x128xf32>
    %c0_1 = arith.constant 0 : index
    %c0_2 = arith.constant 0 : index
    %2 = vector.load %arg1[%c0_1, %c0_2] : memref<8x128xf32, #tpu.memory_space<vmem>>, vector<8x128xf32>
    %c0_3 = arith.constant 0 : index
    %c0_4 = arith.constant 0 : index
    %3 = vector.load %arg2[%c0_3, %c0_4] : memref<8x128xf32, #tpu.memory_space<vmem>>, vector<8x128xf32>
    %4 = arith.subf %2, %3 : vector<8x128xf32>
    %5 = math.absf %4 : vector<8x128xf32>
    %6 = arith.mulf %5, %0 : vector<8x128xf32>
    %7 = vector.shape_cast %6 : vector<8x128xf32> to vector<1x8x128xf32>
    %cst_5 = arith.constant dense<0.000000e+00> : vector<8x128xf32>
    %8 = vector.multi_reduction <add>, %7, %cst_5 [0] : vector<1x8x128xf32> to vector<8x128xf32>
    %9 = arith.addf %1, %8 : vector<8x128xf32>
    %c0_6 = arith.constant 0 : index
    %c0_7 = arith.constant 0 : index
    %10 = vector.load %arg4[%c0_6, %c0_7] : memref<8x128xf32, #tpu.memory_space<vmem>>, vector<8x128xf32>
    tpu.vector_store %arg4[%c0_6, %c0_7], %9 {strides = array<i32>} : memref<8x128xf32, #tpu.memory_space<vmem>>, vector<8x128xf32>,
    return
  }
  func.func @transform_0(%arg0: i32) -> (i32, i32) {
    %c0_i32 = arith.constant 0 : i32
    %c0_i32_0 = arith.constant 0 : i32
    return %arg0, %c0_i32 : i32, i32
  }
  func.func @transform_1(%arg0: i32) -> (i32, i32) {
    %c0_i32 = arith.constant 0 : i32
    %c0_i32_0 = arith.constant 0 : i32
    return %arg0, %c0_i32 : i32, i32
  }
  func.func @transform_2(%arg0: i32) -> (i32, i32) {
    %c0_i32 = arith.constant 0 : i32
    %c0_i32_0 = arith.constant 0 : i32
    %c0_i32_1 = arith.constant 0 : i32
    return %c0_i32, %c0_i32_0 : i32, i32
  }
  func.func @transform_3(%arg0: i32) -> (i32, i32) {
    %c0_i32 = arith.constant 0 : i32
    %c0_i32_0 = arith.constant 0 : i32
    return %arg0, %c0_i32 : i32, i32
  }
}

</mosaic_0001>

<bundles_post_ra>
// kernel: tpu_custom_call.1
= control target key start
LH: loop header
LB: loop body
LE: loop exit
PB: predicated region body
PF: predicated region fallthrough
CT: control target
= control target key end

     0   :  { %8 = vsyncpa [#allocation3], 0  ;;  %s824_s0 = inlined_call_operand.hbm [shape: f32[16,128], index: 0, kind: input, shape index: {}]   ;;  %s825_s1 = inlined_call_operand.hbm [shape: f32[16,128], index: 1, kind: input, shape index: {}]   ;;  %s826_s2 = inlined_call_operand.hbm [shape: f32[8,128], index: 2, kind: input, shape index: {}]   ;;  %s827_s3 = inlined_call_operand.hbm [shape: f32[16,128], index: 3, kind: output, shape index: {}]  }
   0x1   :  { %10 = vsyncpa [#allocation3 + $0x1], 0 }
   0x2   :  { %11 = vsyncpa [#allocation6], 0 }
   0x3   :  { %13 = vsyncpa [#allocation6 + $0x1], 0 }
   0x4   :  { %14 = vsyncpa [#allocation4], 0 }
   0x5   :  { %16 = vsyncpa [#allocation4 + $0x1], 0  ;;  %s619_s12 = smov 0   ;;  %s621_s13 = smov 0  }
   0x6   :  { %s623_s14 = smov 0   ;;  %s625_s15 = smov 0  }
   0x7 LB: > { %s640_s16 = sadd.s32 4294967295, %s593_s15   ;;  %s360_s17 = sadd.s32 4294967294, %s593_s15   ;;  %s593_s15 = sphi %s625_s15, %s850_s15   ;;  %s589_s14 = sphi %s623_s14, %s849_s14   ;;  %s585_s13 = sphi %s621_s13, %s848_s13   ;;  %s581_s12 = sphi %s619_s12, %s847_s12  }
   0x8   : > { %p42_p0 = scmp.ne.s32.totalorder %s585_s13, %s581_s12  ;;  %p828_p1 = scmp.eq.s32.totalorder %s640_s16, 0 }
   0x9   : > { %p119_p3 = scmp.eq.s32.totalorder %s360_s17, 1  ;;  %p361_p5 = scmp.ge.s32.totalorder %s593_s15, 1 }
   0xa   : > { %p649_p4 = por %p828_p1, %p42_p0  ;;  %p126_p7 = scmp.lt.s32.totalorder %s593_s15, 3 }
   0xb   : > { %p654_p6 = por %p119_p3, %p42_p0  ;;  %s595_s21 = smov [#allocation7]  }
   0xc   : > { %s832_s18 = scalar_select %p649_p4, 1, 0 }
   0xd   : > { %s833_s19 = scalar_select %p654_p6, 1, 0 }
   0xe   : > { %p659_p8 = pnand %p361_p5, %p126_p7  ;;  %s139_s22 = sshll.u32 %s595_s21, 4  ;;  %s140_s22 = int_to_ptr.vmem [resolvable:$true] %s139_s22 }
   0xf   : > { %s667_s23 = sadd.s32 1, %s593_s15   ;;  %s29_s27 = sadd.s32 1, %s589_s14 }
  0x10   : > { %s834_s20 = scalar_select %p659_p8, 1, 0 }
  0x11   : > { %p387_p10 = pneg %p659_p8  ;;  %s26_s25 = ssub.s32 %s593_s15, %s667_s23 }
  0x12   : > { %p677_p12 = scmp.eq.s32.totalorder %s26_s25, 0  ;;  %p36_p13 = scmp.ne.s32.totalorder %s589_s14, %s585_s13 }
  0x13   : > { %p671_p11 = pnand %p387_p10, %p828_p1  ;;  %s450_s28 = scalar_lea.vmem %s140_s22, 128 }
  0x14   : > { %p451_p3 = scmp.ne.s32.totalorder %s140_s22, %s450_s28  ;;  %p458_p9 = scmp.lt.s32.totalorder %s140_s22, %s140_s22 }
  0x15   : > { %p441_p0 = pneg %p671_p11  ;;  %p459_p2 = scmp.lt.s32.totalorder %s450_s28, %s450_s28 }
  0x17   : > { %p453_p5 = pnand %p451_p3, %p441_p0  ;;  %p460_p10 = por %p459_p2, %p458_p9 }
  0x19   : > { %p454_p7 = pneg %p453_p5 }
  0x1b   : > { %p461_p1 = pnand %p460_p10, %p454_p7 }
  0x1d   : > { %464 = shalt.err (!%p461_p1)
}
  0x1e   : > { %390 = dma.hbm_to_vmem [thread:$0]  (!%p671_p11), %s826_s2, 128, %s140_s22, [#allocation6]  }
  0x1f   : > { %s694_s4 = scalar_select %p677_p12, %s589_s14, %s29_s27  }
  0x20   : > { %p37_p1 = scmp.eq.s32.totalorder %s593_s15, 0  ;;  %p837_p2 = scmp.eq.s32.totalorder %s640_s16, 1 }
  0x21   : > { %p403_p0 = scmp.lt.s32.totalorder %s593_s15, 2  ;;  %s150_s6 = sand.u32 1, %s589_s14  }
  0x22   : > { %p702_p9 = por %p837_p2, %p36_p13  ;;  %p38_p3 = por %p37_p1, %p36_p13 }
  0x23   : > { %s711_s7 = sshll.u32 %s150_s6, 3  ;;  %s365_s8 = sshll.u32 %s593_s15, 7 }
  0x24   : > { %s838_s5 = scalar_select %p702_p9, 1, 0 }
  0x25   : > { %s717_s11 = scalar_lea.hbm %s824_s0, %s365_s8  ;;  %s154_s17 = scalar_lea.vmem [#allocation2], %s711_s7 }
  0x26   : > { %s161_s21 = sshll.u32 %s154_s17, 4  ;;  %p720_p11 = pnand %p403_p0, %p38_p3  ;;  %s162_s21 = int_to_ptr.vmem [resolvable:$true] %s161_s21 }
  0x27   : > { %s727_s26 = scalar_lea.hbm %s825_s1, %s365_s8  ;;  %s151_s27 = scalar_lea.sflag [#allocation3], %s150_s6 }
  0x28   : > { %s465_s28 = scalar_lea.hbm %s717_s11, 128  ;;  %p467_p13 = pneg %p720_p11 }
  0x29   : > { %p466_p12 = scmp.ne.s32.totalorder %s717_s11, %s465_s28  ;;  %s470_s9 = scalar_lea.hbm %s824_s0, 256 }
  0x2a   : > { %p471_p10 = scmp.lt.s32.totalorder %s717_s11, %s824_s0  ;;  %p472_p1 = scmp.lt.s32.totalorder %s470_s9, %s465_s28 }
  0x2b   : > { %p468_p5 = pnand %p467_p13, %p466_p12 }
  0x2c   : > { %p473_p2 = por %p472_p1, %p471_p10 }
  0x2d   : > { %p469_p7 = pneg %p468_p5 }
  0x2f   : > { %p474_p0 = pnand %p473_p2, %p469_p7 }
  0x31   : > { %477 = shalt.err (!%p474_p0)
}
  0x32   : > { %s478_s6 = scalar_lea.vmem %s162_s21, 128  ;;  %s596_s8 = smov [#allocation2]  }
  0x33   : > { %p479_p3 = scmp.ne.s32.totalorder %s162_s21, %s478_s6  ;;  %s483_s24 = sshll.u32 %s596_s8, 4  ;;  %s484_s24 = int_to_ptr.vmem [resolvable:$false] %s483_s24 }
  0x34   : > { %s485_s25 = scalar_lea.vmem %s484_s24, 256  ;;  %p486_p5 = scmp.lt.s32.totalorder %s162_s21, %s484_s24 }
  0x35   : > { %p481_p6 = pnand %p479_p3, %p467_p13  ;;  %p487_p9 = scmp.lt.s32.totalorder %s485_s25, %s478_s6 }
  0x37   : > { %p482_p12 = pneg %p481_p6  ;;  %p488_p4 = por %p487_p9, %p486_p5 }
  0x39   : > { %p489_p8 = pnand %p488_p4, %p482_p12 }
  0x3b   : > { %492 = shalt.err (!%p489_p8)
}
  0x3c   : > { %394 = dma.hbm_to_vmem [thread:$0]  (!%p720_p11), %s717_s11, 128, %s162_s21, %s151_s27  }
  0x3d   : > { %s168_s28 = sand.u32 1, %s593_s15   ;;  %s172_s29 = scalar_lea.vmem [#allocation5], %s711_s7 }
  0x3e   : > { %s179_s30 = sshll.u32 %s172_s29, 4  ;;  %s169_s9 = scalar_lea.sflag [#allocation6], %s168_s28  ;;  %s180_s30 = int_to_ptr.vmem [resolvable:$true] %s179_s30 }
  0x3f   : > { %s493_s10 = scalar_lea.hbm %s727_s26, 128  ;;  %s498_s8 = scalar_lea.hbm %s825_s1, 256 }
  0x40   : > { %p494_p6 = scmp.ne.s32.totalorder %s727_s26, %s493_s10  ;;  %p499_p9 = scmp.lt.s32.totalorder %s727_s26, %s825_s1 }
  0x41   : > { %p500_p7 = scmp.lt.s32.totalorder %s498_s8, %s493_s10 }
  0x42   : > { %p496_p4 = pnand %p494_p6, %p467_p13 }
  0x43   : > { %p501_p10 = por %p500_p7, %p499_p9 }
  0x44   : > { %p497_p8 = pneg %p496_p4 }
  0x46   : > { %p502_p1 = pnand %p501_p10, %p497_p8 }
  0x48   : > { %505 = shalt.err (!%p502_p1)
}
  0x49   : > { %s506_s7 = scalar_lea.vmem %s180_s30, 128  ;;  %s597_s11 = smov [#allocation5]  }
  0x4a   : > { %p507_p2 = scmp.ne.s32.totalorder %s180_s30, %s506_s7  ;;  %s511_s21 = sshll.u32 %s597_s11, 4  ;;  %s512_s21 = int_to_ptr.vmem [resolvable:$false] %s511_s21 }
  0x4b   : > { %s513_s27 = scalar_lea.vmem %s512_s21, 256  ;;  %p514_p12 = scmp.lt.s32.totalorder %s180_s30, %s512_s21 }
  0x4c   : > { %p509_p0 = pnand %p507_p2, %p467_p13  ;;  %p515_p5 = scmp.lt.s32.totalorder %s513_s27, %s506_s7 }
  0x4e   : > { %p510_p3 = pneg %p509_p0  ;;  %p516_p6 = por %p515_p5, %p514_p12 }
  0x50   : > { %p517_p4 = pnand %p516_p6, %p510_p3 }
  0x52   : > { %520 = shalt.err (!%p517_p4)
}
  0x53   : > { %397 = dma.hbm_to_vmem [thread:$0]  (!%p720_p11), %s727_s26, 128, %s180_s30, %s169_s9  }
  0x54   : > { %p840_p8 = scmp.ne.s32.totalorder %s834_s20, 0 }
  0x55   : > { %s772_s28 = sand.u32 (!%p840_p8), 1, %s585_s13   ;;  %p841_p13 = scmp.ne.s32.totalorder (!%p840_p8), %s832_s18, 0 }
  0x56   : > { %188 = sbr.rel (%p840_p8) target bundleno = 123 (0x7b), region = 32  ;;  %s369_s29 = sshll.u32 (!%p840_p8), %s772_s28, 3 }
  0x57   : > { %s191_s10 = scalar_lea.sflag (!%p840_p8), [#allocation3], %s772_s28  ;;  %s194_s17 = scalar_lea.vmem (!%p840_p8), [#allocation2], %s369_s29 }
  0x5b   : > { %564 = dma.done.wait (%p841_p13), %s191_s10, 128  }
  0x5c   : > { %566 = vsyncadd (%p841_p13), %s191_s10, 4294967168  ;;  %s199_s22 = sand.u32 1, %s640_s16   ;;  %s203_s20 = scalar_lea.vmem [#allocation5], %s369_s29 }
  0x5d   : > { %s200_s26 = scalar_lea.sflag [#allocation6], %s199_s22 }
  0x5e   : > { %568 = dma.done.wait (%p841_p13), %s200_s26, 128  }
  0x5f   : > { %570 = vsyncadd (%p841_p13), %s200_s26, 4294967168  ;;  %p842_p11 = scmp.eq.s32.totalorder %s640_s16, 0 }
  0x61   : > { %572 = dma.done.wait (%p842_p11), [#allocation6], 128   ;;  %p843_p9 = pmov %p842_p11 }
  0x62   : > { %v236_v0 = vld [vmem:[%s194_s17] sm:$0xff]  ;;  %v237_v1 = vld [vmem:[%s203_s20] sm:$0xff]  ;;  %s234_s30 = scalar_lea.vmem [#allocation8], %s369_s29  ;;  %s374_s6 = sshll.u32 %s640_s16, 7 }
  0x63   : > { %574 = vsyncadd (%p843_p9), [#allocation6], 4294967168  ;;  %v238_v2 = vsub.f32 %v236_v0, %v237_v1  ;;  %v235_v3 = vld [vmem:[#allocation7] sm:$0xff]  ;;  %s258_s9 = sshll.u32 %s234_s30, 4  ;;  %s256_s24 = scalar_lea.hbm %s827_s3, %s374_s6  ;;  %s259_s9 = int_to_ptr.vmem [resolvable:$true] %s258_s9 }
  0x64   : > { %s245_s25 = scalar_lea.sflag [#allocation4], %s772_s28  ;;  %s521_s7 = scalar_lea.vmem %s259_s9, 128 }
  0x65   : > { %v239_v4 = vand.u32 2147483647, %v238_v2  ;;  %p522_p7 = scmp.ne.s32.totalorder %s259_s9, %s521_s7  ;;  %p844_p10 = scmp.ne.s32.totalorder %s838_s5, 0 }
  0x66   : > { %s598_s11 = smov [#allocation8]  }
  0x67   : > { %v240_v5 = vmul.f32 %v239_v4, %v235_v3  ;;  %p523_p1 = pnand %p522_p7, %p844_p10  ;;  %s525_s21 = sshll.u32 %s598_s11, 4  ;;  %s526_s21 = int_to_ptr.vmem [resolvable:$false] %s525_s21 }
  0x68   : > { %s527_s27 = scalar_lea.vmem %s526_s21, 256  ;;  %p528_p0 = scmp.lt.s32.totalorder %s259_s9, %s526_s21 }
  0x69   : > { %243 = vst [vmem:[%s234_s30] sm:$0xff] %v240_v5  ;;  %p524_p2 = pneg %p523_p1  ;;  %p529_p3 = scmp.lt.s32.totalorder %s527_s27, %s521_s7 }
  0x6b   : > { %p530_p12 = por %p529_p3, %p528_p0 }
  0x6d   : > { %p531_p5 = pnand %p530_p12, %p524_p2 }
  0x6f   : > { %534 = shalt.err (!%p531_p5)
}
  0x70   : > { %s535_s16 = scalar_lea.hbm %s256_s24, 128  ;;  %s539_s10 = scalar_lea.hbm %s827_s3, 256 }
  0x71   : > { %p536_p6 = scmp.ne.s32.totalorder %s256_s24, %s535_s16  ;;  %p540_p13 = scmp.lt.s32.totalorder %s256_s24, %s827_s3 }
  0x72   : > { %p541_p11 = scmp.lt.s32.totalorder %s539_s10, %s535_s16 }
  0x73   : > { %p537_p4 = pnand %p536_p6, %p844_p10 }
  0x74   : > { %p542_p9 = por %p541_p11, %p540_p13 }
  0x75   : > { %p538_p8 = pneg %p537_p4 }
  0x77   : > { %p543_p7 = pnand %p542_p9, %p538_p8 }
  0x79   : > { %546 = shalt.err (!%p543_p7)
}
  0x7a   : > { %385 = dma.vmem_to_hbm [thread:$0]  (%p844_p10), %s259_s9, 128, %s256_s24, %s245_s25  }
  0x7b PF: > { %s270_s26 = sand.u32 1, %s581_s12   ;;  %p845_p1 = scmp.ne.s32.totalorder %s833_s19, 0 }
  0x7c   : > { %p846_p2 = scmp.ge.s32.totalorder %s593_s15, 2  ;;  %s271_s20 = scalar_lea.sflag [#allocation4], %s270_s26 }
  0x7e   : > { %p399_p0 = pnand %p846_p2, %p845_p1 }
  0x80   : > { %p400_p3 = pneg %p399_p0 }
  0x82   : > { %576 = dma.done.wait (%p400_p3), %s271_s20, 128  }
  0x83   : > { %578 = vsyncadd (%p400_p3), %s271_s20, 4294967168  ;;  %p19_p12 = scmp.ge.s32.totalorder %s667_s23, 4   ;;  %s847_s12 = smov %s585_s13 }
  0x84   : > { %s848_s13 = smov %s589_s14  ;;  %s849_s14 = smov %s694_s4 }
  0x85   : > { %s850_s15 = smov %s667_s23  ;;  %21 = sbr.rel (!%p19_p12) target bundleno = 7 (0x7), region = 94 }
  0x8a   :  { %276 = vsyncpa [#allocation3], 1 }
  0x8b   :  { %278 = vsyncpa [#allocation3 + $0x1], 1 }
  0x8c   :  { %279 = vsyncpa [#allocation6], 1 }
  0x8d   :  { %281 = vsyncpa [#allocation6 + $0x1], 1 }
  0x8e   :  { %282 = vsyncpa [#allocation4], 1 }
  0x8f   :  { %284 = vsyncpa [#allocation4 + $0x1], 1 }

</bundles_post_ra>
